<compile_context>
chip_gen: v7x
topology: tpu7x:2x2x1
jax: 0.10.0
libtpu: 0.0.40
codegen_flags: <defaults>
</compile_context>

<pallas_src>
import functools

import jax
import jax.numpy as jnp
from jax.experimental import pallas as pl
from jax.experimental.pallas import tpu as pltpu


def _round_up(x, m):
    return ((x + m - 1) // m) * m


def _vmem_capacity_bytes():
    """Physical VMEM per TensorCore; falls back to the smallest (v7x, 64 MiB)."""
    try:
        cap = getattr(pltpu.get_tpu_info(), "vmem_capacity_bytes", None)
        if cap:
            return int(cap)
    except Exception:
        pass
    return 64 << 20


def _choose_tiles(rows, hw, itemsize, target_block_bytes, tile_rows, tile_cols):
    """Pick (tile_rows, tile_cols).  tile_rows % 8 == 0; tile_cols is either the
    full spatial extent or a multiple of 128 that divides it exactly (so no
    column masking is ever required)."""
    budget_elems = max(8 * 128, target_block_bytes // itemsize)

    # ---- lane (spatial) tile -------------------------------------------------
    if tile_cols is None:
        full_cols_cap = max(128, budget_elems // 8)   # full extent still allows >= 8 rows
        if hw % 128 != 0 or hw <= full_cols_cap:
            tile_cols = hw                            # single column tile -> no reduction axis
        else:
            cap = (full_cols_cap // 128) * 128
            tile_cols = 128                           # 128 always divides hw here
            for c in range(cap, 127, -128):
                if hw % c == 0:
                    tile_cols = c
                    break
    else:
        tile_cols = int(tile_cols)
        if tile_cols != hw and (tile_cols % 128 != 0 or hw % tile_cols != 0):
            raise ValueError(
                "tile_cols must equal H*W or be a multiple of 128 that divides "
                f"H*W exactly; got tile_cols={tile_cols}, H*W={hw}")

    # ---- sublane (row) tile ----------------------------------------------------
    if tile_rows is None:
        rows8 = _round_up(rows, 8)
        budget_rows = max(8, (budget_elems // max(tile_cols, 1)) // 8 * 8)
        if rows8 <= budget_rows:
            tile_rows = rows8                         # single row tile
        else:
            # Search [budget/2, budget] multiples of 8; prefer exact divisors of
            # rows (no ragged tail), then an even row-tile count (2-TC balance),
            # then the larger tile.
            lo = max(8, (budget_rows // 2) // 8 * 8)
            best, best_key = None, None
            for tr in range(budget_rows, lo - 1, -8):
                n_rt = -(-rows // tr)
                key = (rows % tr == 0, n_rt % 2 == 0, tr)
                if best_key is None or key > best_key:
                    best, best_key = tr, key
            tile_rows = best
    else:
        tile_rows = _round_up(int(tile_rows), 8)      # enforce the 8-sublane rule on overrides
    return int(tile_rows), int(tile_cols)


def _joints_mse_kernel(*refs, rows, tile_rows, tile_cols, n_ct, has_weight):
    it = iter(refs)
    pred_ref = next(it)
    gt_ref = next(it)
    w_ref = next(it) if has_weight else None
    out_ref = next(it)
    acc_ref = next(it) if n_ct > 1 else None

    ri = pl.program_id(0)

    # ---- streaming hot path: (pred - gt)^2 only -------------------------------
    if pred_ref.dtype == gt_ref.dtype:
        # Subtract in the input dtype (native bf16 VALU on v6e/v7x), upcast the diff.
        diff = (pred_ref[...] - gt_ref[...]).astype(jnp.float32)
    else:
        diff = pred_ref[...].astype(jnp.float32) - gt_ref[...].astype(jnp.float32)
    d2 = diff * diff

    if tile_cols % 128 == 0 and tile_cols > 128:
        # Fold the lane axis into a 128-wide slab with static, vreg-aligned
        # slices: pure VPU adds (no XLU, no relayout, tiny accumulator RMW).
        folded = d2[:, 0:128]
        for k in range(1, tile_cols // 128):
            folded = folded + d2[:, k * 128:(k + 1) * 128]
    else:
        folded = d2

    def finalize(block):
        # One cross-lane reduce per row tile, then the hoisted per-row weight
        # and the ragged-row mask only on the tiny (tile_rows, 1) column.
        row_sums = jnp.sum(block, axis=1, keepdims=True)
        if has_weight:
            w = w_ref[...].astype(jnp.float32)        # (tile_rows, 1)
            row_sums = row_sums * (w * w)             # w*(p-g) squared == w^2*(p-g)^2
        if rows % tile_rows:
            rid = jax.lax.broadcasted_iota(jnp.int32, (tile_rows, 1), 0)
            row_sums = jnp.where(ri * tile_rows + rid < rows, row_sums, 0.0)
        out_ref[0, 0] = jnp.sum(row_sums)

    if n_ct == 1:
        finalize(folded)                              # no accumulator at all
    else:
        ci = pl.program_id(1)

        @pl.when(ci == 0)
        def _init():
            acc_ref[...] = folded                     # init by assignment: no zeroing pass

        @pl.when(ci > 0)
        def _accumulate():
            acc_ref[...] += folded

        @pl.when(ci == n_ct - 1)
        def _finish():
            finalize(acc_ref[...])


def joints_mse_loss(output, target, target_weight=None, use_target_weight=False,
                    tile_rows=None, tile_cols=None):
    """output, target: (B, J, H, W); target_weight: (B, J, 1) or None."""
    B, J, H, W = output.shape
    hw = H * W
    rows = B * J

    # (B*J, H*W) views; input dtype preserved (bf16 streams half the HBM bytes).
    pred2d = output.reshape(rows, hw)
    gt2d = target.reshape(rows, hw)

    in_itemsize = max(jnp.dtype(output.dtype).itemsize,
                      jnp.dtype(target.dtype).itemsize)

    # Generation-aware block budget: v7x (64 MiB VMEM, 3.2 TB/s HBM) wants bigger
    # blocks to amortise the ~0.35 us/step overhead; 128 MiB-VMEM chips are
    # already at the HBM roofline with ~3 MiB blocks.
    vmem_cap = _vmem_capacity_bytes()
    target_block_bytes = (6 << 20) if vmem_cap <= (96 << 20) else (3 << 20)

    tile_rows, tile_cols = _choose_tiles(rows, hw, in_itemsize,
                                         target_block_bytes, tile_rows, tile_cols)
    n_rt = pl.cdiv(rows, tile_rows)
    n_ct = pl.cdiv(hw, tile_cols)

    has_weight = bool(use_target_weight)
    operands = [pred2d, gt2d]
    in_specs = [
        pl.BlockSpec((tile_rows, tile_cols), lambda ri, ci: (ri, ci)),
        pl.BlockSpec((tile_rows, tile_cols), lambda ri, ci: (ri, ci)),
    ]
    if has_weight:
        if target_weight is None:
            raise ValueError("target_weight is required when use_target_weight=True")
        w2d = target_weight.reshape(rows, 1).astype(jnp.float32)
        operands.append(w2d)
        # Tiny per-row-tile block; constant block index across the reduction axis
        # (DMA'd once per row tile) and only read in the finalize branch.
        in_specs.append(pl.BlockSpec((tile_rows, 1), lambda ri, ci: (ri, 0)))

    scratch_shapes = []
    if n_ct > 1:
        scratch_shapes.append(pltpu.VMEM((tile_rows, 128), jnp.float32))

    # VMEM budget from the actual buffers (+8 MiB headroom), clamped to the chip.
    vmem_needed = 2 * 2 * tile_rows * tile_cols * in_itemsize        # pred + gt, double buffered
    vmem_needed += tile_rows * 128 * 4 if n_ct > 1 else 0            # lane-folded accumulator
    vmem_needed += 2 * tile_rows * 128 * 4 if has_weight else 0      # lane-padded weight blocks
    vmem_limit = min(max(vmem_needed + (8 << 20), 32 << 20),
                     max(vmem_cap - (8 << 20), 32 << 20))
    if vmem_needed > vmem_limit:
        raise ValueError(
            f"Requested tiles ({tile_rows}x{tile_cols}) need ~{vmem_needed >> 20} MiB of "
            f"VMEM, above the ~{vmem_limit >> 20} MiB budget of this TPU; pass smaller "
            "tile_rows/tile_cols.")

    kernel = functools.partial(_joints_mse_kernel, rows=rows, tile_rows=tile_rows,
                               tile_cols=tile_cols, n_ct=int(n_ct),
                               has_weight=has_weight)

    partials = pl.pallas_call(
        kernel,
        out_shape=jax.ShapeDtypeStruct((n_rt, 1), jnp.float32),
        grid_spec=pltpu.PrefetchScalarGridSpec(
            num_scalar_prefetch=0,
            grid=(n_rt, n_ct),
            in_specs=in_specs,
            out_specs=pl.BlockSpec((1, 1), lambda ri, ci: (ri, 0),
                                   memory_space=pltpu.SMEM),
            scratch_shapes=scratch_shapes,
        ),
        compiler_params=pltpu.CompilerParams(
            dimension_semantics=("parallel", "arbitrary"),
            vmem_limit_bytes=int(vmem_limit)),
    )(*operands)

    scale = 0.5 / (J * B * hw)
    return (jnp.sum(partials) * scale).astype(jnp.float32)


def _reference_loss(output, target, target_weight=None, use_target_weight=False):
    """Pure-JAX mirror of the PyTorch forward, for verification."""
    B, J, H, W = output.shape
    pred = output.reshape(B, J, -1).astype(jnp.float32)
    gt = target.reshape(B, J, -1).astype(jnp.float32)
    loss = 0.0
    for idx in range(J):
        p = pred[:, idx, :]
        g = gt[:, idx, :]
        if use_target_weight:
            w = target_weight[:, idx].astype(jnp.float32)    # (B, 1)
            p = p * w
            g = g * w
        loss += 0.5 * jnp.mean((p - g) ** 2)
    return loss / J


if __name__ == "__main__":
    key = jax.random.PRNGKey(0)
    k1, k2, k3 = jax.random.split(key, 3)
    ok = True

    # Case 1: small HRNet-like shapes, f32, both weight modes, auto tiling
    # (single block: n_rt == n_ct == 1, no accumulator path).
    B, J, H, W = 2, 4, 16, 16
    output = jax.random.normal(k1, (B, J, H, W), dtype=jnp.float32)
    target = jax.random.normal(k2, (B, J, H, W), dtype=jnp.float32)
    target_weight = (jax.random.uniform(k3, (B, J, 1), dtype=jnp.float32) > 0.3
                     ).astype(jnp.float32)
    for use_tw in (False, True):
        loss = jax.block_until_ready(
            joints_mse_loss(output, target, target_weight, use_target_weight=use_tw))
        ref = _reference_loss(output, target, target_weight, use_target_weight=use_tw)
        ok &= bool(jnp.allclose(loss, ref, rtol=1e-5, atol=1e-6))

    # Case 2: ragged rows + multi-column-tile reduction (exercises the lane-folded
    # accumulator, init-by-assign, finalize weight hoist and the row mask).
    B2, J2, H2, W2 = 2, 9, 16, 16        # rows = 18 (ragged vs 8), hw = 256 -> n_ct = 2
    o2 = jax.random.normal(k1, (B2, J2, H2, W2), dtype=jnp.float32)
    t2 = jax.random.normal(k2, (B2, J2, H2, W2), dtype=jnp.float32)
    w2 = (jax.random.uniform(k3, (B2, J2, 1), dtype=jnp.float32) > 0.3
          ).astype(jnp.float32)
    for use_tw in (True, False):
        loss2 = jax.block_until_ready(
            joints_mse_loss(o2, t2, w2, use_target_weight=use_tw,
                            tile_rows=8, tile_cols=128))
        ref2 = _reference_loss(o2, t2, w2, use_target_weight=use_tw)
        ok &= bool(jnp.allclose(loss2, ref2, rtol=1e-5, atol=1e-6))

    # Case 3: spatial extent not a multiple of 128 + rows not a multiple of 8,
    # auto tiling (single ragged block, full-extent lane dim).
    B3, J3, H3, W3 = 2, 9, 16, 20        # rows = 18, hw = 320
    o3 = jax.random.normal(k1, (B3, J3, H3, W3), dtype=jnp.float32)
    t3 = jax.random.normal(k2, (B3, J3, H3, W3), dtype=jnp.float32)
    w3 = (jax.random.uniform(k3, (B3, J3, 1), dtype=jnp.float32) > 0.3
          ).astype(jnp.float32)
    loss3 = jax.block_until_ready(
        joints_mse_loss(o3, t3, w3, use_target_weight=True))
    ref3 = _reference_loss(o3, t3, w3, use_target_weight=True)
    ok &= bool(jnp.allclose(loss3, ref3, rtol=1e-5, atol=1e-6))

    # Case 4: bf16 heatmaps (in-kernel bf16 subtract, f32 square/accumulate).
    o4 = jax.random.normal(k1, (2, 4, 32, 32), dtype=jnp.bfloat16)
    t4 = jax.random.normal(k2, (2, 4, 32, 32), dtype=jnp.bfloat16)
    w4 = (jax.random.uniform(k3, (2, 4, 1), dtype=jnp.float32) > 0.3
          ).astype(jnp.float32)
    loss4 = jax.block_until_ready(
        joints_mse_loss(o4, t4, w4, use_target_weight=True))
    ref4 = _reference_loss(o4, t4, w4, use_target_weight=True)
    ok &= bool(jnp.allclose(loss4, ref4, rtol=5e-2, atol=1e-3))

    if ok:
        print("KERNEL_OK")
    else:
        print("MISMATCH")
</pallas_src>

<mosaic_0001>
module attributes {stable_mosaic.version = 11 : i64} {
  func.func @_joints_mse_kernel(%arg0: i32, %arg1: i32, %arg2: memref<8x256xf32, #tpu.memory_space<vmem>>, %arg3: memref<8x256xf32, #tpu.memory_space<vmem>>, %arg4: memref<1x1xf32, #tpu.memory_space<smem>>) attributes {dimension_semantics = [#tpu.dimension_semantics<parallel>, #tpu.dimension_semantics<arbitrary>], iteration_bounds = array<i64: 1, 1>, scalar_prefetch = 0 : i64, scratch_operands = 0 : i64, tpu.core_type = #tpu.core_type<tc>, window_params = [{transform_indices = @transform_0, window_bounds = array<i64: 8, 256>}, {transform_indices = @transform_1, window_bounds = array<i64: 8, 256>}, {transform_indices = @transform_2, window_bounds = array<i64: 1, 1>}]} {
    %c0 = arith.constant 0 : index
    %c0_0 = arith.constant 0 : index
    %0 = vector.load %arg2[%c0, %c0_0] : memref<8x256xf32, #tpu.memory_space<vmem>>, vector<8x256xf32>
    %c0_1 = arith.constant 0 : index
    %c0_2 = arith.constant 0 : index
    %1 = vector.load %arg3[%c0_1, %c0_2] : memref<8x256xf32, #tpu.memory_space<vmem>>, vector<8x256xf32>
    %2 = arith.subf %0, %1 : vector<8x256xf32>
    %3 = arith.mulf %2, %2 : vector<8x256xf32>
    %4 = vector.extract_strided_slice %3 {offsets = [0, 0], sizes = [8, 128], strides = [1, 1]} : vector<8x256xf32> to vector<8x128xf32>
    %5 = vector.extract_strided_slice %3 {offsets = [0, 128], sizes = [8, 128], strides = [1, 1]} : vector<8x256xf32> to vector<8x128xf32>
    %6 = arith.addf %4, %5 : vector<8x128xf32>
    %cst = arith.constant dense<0.000000e+00> : vector<8xf32>
    %7 = vector.multi_reduction <add>, %6, %cst [1] : vector<8x128xf32> to vector<8xf32>
    %8 = vector.shape_cast %7 : vector<8xf32> to vector<8x1xf32>
    %9 = vector.shape_cast %8 : vector<8x1xf32> to vector<1x8x1xf32>
    %cst_3 = arith.constant dense<0.000000e+00> : vector<1xf32>
    %10 = vector.multi_reduction <add>, %9, %cst_3 [1, 2] : vector<1x8x1xf32> to vector<1xf32>
    %11 = vector.shape_cast %10 : vector<1xf32> to vector<1x1x1xf32>
    %12 = vector.extract %11[0, 0, 0] : f32 from vector<1x1x1xf32>
    %c0_4 = arith.constant 0 : index
    %c0_5 = arith.constant 0 : index
    %13 = memref.load %arg4[%c0_4, %c0_5] : memref<1x1xf32, #tpu.memory_space<smem>>
    memref.store %12, %arg4[%c0_4, %c0_5] : memref<1x1xf32, #tpu.memory_space<smem>>
    return
  }
  func.func @transform_0(%arg0: i32, %arg1: i32) -> (i32, i32) {
    %c0_i32 = arith.constant 0 : i32
    return %arg0, %arg1 : i32, i32
  }
  func.func @transform_1(%arg0: i32, %arg1: i32) -> (i32, i32) {
    %c0_i32 = arith.constant 0 : i32
    return %arg0, %arg1 : i32, i32
  }
  func.func @transform_2(%arg0: i32, %arg1: i32) -> (i32, i32) {
    %c0_i32 = arith.constant 0 : i32
    %c0_i32_0 = arith.constant 0 : i32
    return %arg0, %c0_i32 : i32, i32
  }
}

</mosaic_0001>

<bundles_post_ra>
// kernel: tpu_custom_call.1
= control target key start
LH: loop header
LB: loop body
LE: loop exit
PB: predicated region body
PF: predicated region fallthrough
CT: control target
= control target key end

     0   :  { %7 = vsyncpa [#allocation3], 0  ;;  %s194_s0 = inlined_call_operand.hbm [shape: f32[8,256], index: 0, kind: input, shape index: {}]   ;;  %s195_s1 = inlined_call_operand.hbm [shape: f32[8,256], index: 1, kind: input, shape index: {}]   ;;  %s196_s2 = inlined_call_operand.hbm [shape: f32[1,1], index: 2, kind: output, shape index: {}]  }
   0x1   :  { %8 = vsyncpa [#allocation6], 0 }
   0x2   :  { %9 = vsyncpa [#allocation4], 0  ;;  %s140_s9 = smov [#allocation2]   ;;  %s141_s11 = smov [#allocation5]  }
   0x3   :  { %s16_s10 = sshll.u32 %s140_s9, 4  ;;  %s26_s12 = sshll.u32 %s141_s11, 4  ;;  %s17_s10 = int_to_ptr.vmem [resolvable:$true] %s16_s10  ;;  %s27_s12 = int_to_ptr.vmem [resolvable:$true] %s26_s12 }
   0x4   :  { %s80_s15 = scalar_lea.hbm %s194_s0, 256 }
   0x5   :  { %p81_p0 = scmp.ne.s32.totalorder %s194_s0, %s80_s15  ;;  %p84_p1 = scmp.lt.u32.totalorder %s80_s15, %s194_s0 }
   0x7   :  { %p86_p2 = pnand %p84_p1, %p81_p0 }
   0x9   :  { %89 = shalt.err (!%p86_p2)
}
   0xa   :  { %s90_s20 = scalar_lea.vmem %s17_s10, 256  ;;  %p95_p4 = scmp.lt.s32.totalorder %s17_s10, %s17_s10 }
   0xb   :  { %p91_p3 = scmp.ne.s32.totalorder %s17_s10, %s90_s20  ;;  %p96_p5 = scmp.lt.s32.totalorder %s90_s20, %s90_s20 }
   0xd   :  { %p97_p6 = por %p96_p5, %p95_p4 }
   0xf   :  { %p98_p7 = pnand %p97_p6, %p91_p3 }
  0x11   :  { %101 = shalt.err (!%p98_p7)
}
  0x12   :  { %19 = dma.hbm_to_vmem [thread:$0]  %s194_s0, 256, %s17_s10, [#allocation3]  }
  0x13   :  { %s102_s25 = scalar_lea.hbm %s195_s1, 256 }
  0x14   :  { %p103_p8 = scmp.ne.s32.totalorder %s195_s1, %s102_s25  ;;  %p106_p9 = scmp.lt.u32.totalorder %s102_s25, %s195_s1 }
  0x16   :  { %p108_p10 = pnand %p106_p9, %p103_p8 }
  0x18   :  { %111 = shalt.err (!%p108_p10)
}
  0x19   :  { %s112_s30 = scalar_lea.vmem %s27_s12, 256  ;;  %p117_p12 = scmp.lt.s32.totalorder %s27_s12, %s27_s12 }
  0x1a   :  { %p113_p11 = scmp.ne.s32.totalorder %s27_s12, %s112_s30  ;;  %p118_p13 = scmp.lt.s32.totalorder %s112_s30, %s112_s30 }
  0x1c   :  { %p119_p0 = por %p118_p13, %p117_p12 }
  0x1e   :  { %p120_p1 = pnand %p119_p0, %p113_p11 }
  0x20   :  { %123 = shalt.err (!%p120_p1)
}
  0x21   :  { %29 = dma.hbm_to_vmem [thread:$0]  %s195_s1, 256, %s27_s12, [#allocation6]  }
  0x22   :  { %134 = dma.done.wait [#allocation3], 256  }
  0x23   :  { %135 = vsyncadd [#allocation3], 4294967040 }
  0x24   :  { %136 = dma.done.wait [#allocation6], 256  }
  0x25   :  { %137 = vsyncadd [#allocation6], 4294967040  ;;  %v36_v0 = vld [vmem:[#allocation2] sm:$0xff]  ;;  %v37_v1 = vld [vmem:[#allocation2 + $0x8] sm:$0xff]  ;;  %vm47_vm0 = vcmask 7168   ;;  %s124_s6 = scalar_lea.hbm %s196_s2, 16 }
  0x26   :  { %v38_v2 = vld [vmem:[#allocation5] sm:$0xff]  ;;  %v39_v3 = vld [vmem:[#allocation5 + $0x8] sm:$0xff]  ;;  %p125_p2 = scmp.ne.s32.totalorder %s196_s2, %s124_s6  ;;  %p128_p3 = scmp.lt.u32.totalorder %s124_s6, %s196_s2 }
  0x27   :  { %v40_v4 = vsub.f32 %v36_v0, %v38_v2  ;;  %v41_v5 = vsub.f32 %v37_v1, %v39_v3 }
  0x28   :  { %p130_p4 = pnand %p128_p3, %p125_p2 }
  0x29   :  { %v42_v6 = vmul.f32 %v40_v4, %v40_v4  ;;  %v43_v7 = vmul.f32 %v41_v5, %v41_v5 }
  0x2b   :  { %v44_v8 = vadd.f32 %v43_v7, %v42_v6 }
  0x2d   :  { %45 = vadd.xlane.f32.xlu0 %v44_v8 }
  0xba   :  { %v46_v9 = vpop.xlane.xlu0 %45 }
  0xbb   :  { %v48_v10 = vsel %vm47_vm0, %v46_v9, 0.0 }
  0xbc   :  { %49 = vadd.xlane.f32.xlu0 %v48_v10 }
 0x149   :  { %v50_v11 = vpop.xlane.xlu0 %49 }
 0x14a   :  { %v51_v12 = vrot.slane %v50_v11, 4 }
 0x14c   :  { %v52_v13 = vadd.f32 %v51_v12, %v50_v11 }
 0x14e   :  { %v53_v14 = vrot.slane %v52_v13, 2 }
 0x150   :  { %v54_v15 = vadd.f32 %v53_v14, %v52_v13 }
 0x152   :  { %v55_v16 = vrot.slane %v54_v15, 1 }
 0x154   :  { %v56_v17 = vadd.f32 %v55_v16, %v54_v15 }
 0x156   :  { %75 = vpush %v56_v17 }
 0x187   :  { %s76_s1 = spop %75 }
 0x188   :  { %59 = sst [smem:[#allocation7]] %s76_s1 }
 0x189   :  { %133 = shalt.err (!%p130_p4)
}
 0x18a   :  { %s142_s11 = smov [#allocation7]  }
 0x18b   :  { %67 = dma.smem_to_hbm %s142_s11, 16, %s196_s2, [#allocation4]  }
 0x18c   :  { %138 = dma.done.wait [#allocation4], 16  }
 0x18d   :  { %139 = vsyncadd [#allocation4], 4294967280 }
 0x18e   :  { %71 = sfence }
 0x18f   :  { %72 = vsyncpa [#allocation3], 1 }
 0x190   :  { %73 = vsyncpa [#allocation6], 1 }
 0x191   :  { %74 = vsyncpa [#allocation4], 1 }

</bundles_post_ra>
